<compile_context>
chip_gen: v7x
topology: tpu7x:2x2x1
jax: 0.10.0
libtpu: 0.0.40
codegen_flags: <defaults>
</compile_context>

<pallas_src>
import functools

import jax
import jax.numpy as jnp
from jax.experimental import pallas as pl
from jax.experimental.pallas import tpu as pltpu


_INV_SQRT2 = 0.7071067811865476


def _gelu(x, approximate):
    if approximate:
        # tanh approximation: one EUP op in an otherwise idle slot.
        # NOTE: numerics differ slightly from torch.nn.GELU() default.
        return jax.nn.gelu(x, approximate=True)
    # Exact erf GELU, matches torch.nn.GELU() default.
    return 0.5 * x * (1.0 + jax.lax.erf(x * _INV_SQRT2))


def _adapter_kernel(x_ref, w1_ref, b1_ref, w2_ref, b2_ref, o_ref, *,
                    skip_connect, approximate_gelu):
    x = x_ref[...]                                                     # [tm, D]

    # fc1 on the MXU with f32 accumulation; bias + GELU epilogue in f32.
    h = jnp.dot(x, w1_ref[...], preferred_element_type=jnp.float32)   # [tm, Dh]
    h = _gelu(h + b1_ref[...].astype(jnp.float32), approximate_gelu)

    # fc2 on the MXU (activations cast back to the weight dtype, e.g. bf16).
    y = jnp.dot(h.astype(w2_ref.dtype), w2_ref[...],
                preferred_element_type=jnp.float32)                    # [tm, D]
    y = y + b2_ref[...].astype(jnp.float32)

    if skip_connect:
        y = y + x.astype(jnp.float32)

    o_ref[...] = y.astype(o_ref.dtype)


def _round_up(n, m):
    return ((n + m - 1) // m) * m


def _vmem_cap_bytes():
    """Generation-aware VMEM budget: ~75% of physical per-core VMEM."""
    try:
        info = pltpu.get_tpu_info()
        return int(info.vmem_capacity_bytes * 3 // 4)
    except Exception:
        # Safe across v5e / v6e / v7x if the query is unavailable.
        return 48 * 1024 * 1024


def adapter_forward(x, w1_t, b1, w2_t, b2, *, skip_connect=True, tm=512,
                    approximate_gelu=False):
    """Fused Adapter forward.

    x:    [..., D]
    w1_t: [D, Dh]   (D_fc1 weight, already transposed from PyTorch's [Dh, D])
    b1:   [Dh]
    w2_t: [Dh, D]   (D_fc2 weight, already transposed from PyTorch's [D, Dh])
    b2:   [D]

    For memory-bound adapter sizes on v6e/v7x, cast x / w1_t / w2_t to bf16
    once at parameter-prep time; accumulation, epilogue and residual stay f32.
    """
    orig_shape = x.shape
    D = orig_shape[-1]
    Dh = w1_t.shape[-1]
    assert w1_t.shape == (D, Dh), (w1_t.shape, (D, Dh))
    assert w2_t.shape == (Dh, D), (w2_t.shape, (Dh, D))
    assert b1.shape == (Dh,) and b2.shape == (D,)

    M = 1
    for s in orig_shape[:-1]:
        M *= s
    x2d = x.reshape(M, D)

    x_itemsize = jnp.dtype(x.dtype).itemsize
    out_itemsize = x_itemsize
    weights_bytes = (D * Dh * jnp.dtype(w1_t.dtype).itemsize
                     + Dh * D * jnp.dtype(w2_t.dtype).itemsize
                     + (Dh + D) * 4)
    vmem_cap = _vmem_cap_bytes()
    margin = 2 * 1024 * 1024  # compiler scratch / misc headroom

    def _footprint(t):
        # double-buffered x + out slabs, single-buffered resident weights,
        # in-kernel f32 temporaries (h tile + y tile).
        return (2 * t * D * x_itemsize
                + 2 * t * D * out_itemsize
                + weights_bytes
                + t * Dh * 4 + 2 * t * D * 4)

    # Initial row tile: requested size, multiple of 8, no larger than M.
    tm_eff = _round_up(min(tm, max(M, 1)), 8)
    # Guarantee >= 2 grid steps so ("parallel",) can use both v7x TensorCores.
    two_step_cap = _round_up(pl.cdiv(max(M, 1), 2), 8)
    tm_eff = max(8, min(tm_eff, two_step_cap))

    # Shrink only if the tile genuinely does not fit, never below 256 rows
    # (or below the already-small tile for tiny M).
    tm_floor = min(256, tm_eff)
    while tm_eff > tm_floor and _footprint(tm_eff) + margin > vmem_cap:
        tm_eff = max(tm_floor, _round_up(tm_eff // 2, 8))

    M_pad = _round_up(M, tm_eff)
    if M_pad != M:
        x2d = jnp.pad(x2d, ((0, M_pad - M), (0, 0)))

    b1_2d = b1.reshape(1, Dh)
    b2_2d = b2.reshape(1, D)

    grid = (M_pad // tm_eff,)
    vmem_limit = int(min(max(_footprint(tm_eff) + margin, 32 * 1024 * 1024),
                         vmem_cap))

    kernel = functools.partial(_adapter_kernel, skip_connect=skip_connect,
                               approximate_gelu=approximate_gelu)

    def _run(single_buffer_weights):
        def _resident_spec(shape):
            idx_map = lambda i: (0,) * len(shape)
            if single_buffer_weights:
                # Constant index_map => DMA'd once; one VMEM buffer is enough.
                return pl.BlockSpec(shape, idx_map,
                                    pipeline_mode=pl.Buffered(1))
            return pl.BlockSpec(shape, idx_map)

        return pl.pallas_call(
            kernel,
            out_shape=jax.ShapeDtypeStruct((M_pad, D), x.dtype),
            grid_spec=pltpu.PrefetchScalarGridSpec(
                num_scalar_prefetch=0,
                grid=grid,
                in_specs=[
                    pl.BlockSpec((tm_eff, D), lambda i: (i, 0)),   # x row slab
                    _resident_spec((D, Dh)),                       # W1^T
                    _resident_spec((1, Dh)),                       # b1
                    _resident_spec((Dh, D)),                       # W2^T
                    _resident_spec((1, D)),                        # b2
                ],
                out_specs=pl.BlockSpec((tm_eff, D), lambda i: (i, 0)),
            ),
            compiler_params=pltpu.CompilerParams(
                dimension_semantics=("parallel",),
                vmem_limit_bytes=vmem_limit,
            ),
        )(x2d, w1_t, b1_2d, w2_t, b2_2d)

    try:
        out = _run(single_buffer_weights=True)
    except Exception:
        # Older jax without pipeline_mode= / Buffered(1) on TPU BlockSpecs.
        out = _run(single_buffer_weights=False)

    if M_pad != M:
        out = out[:M]
    return out.reshape(orig_shape)


def adapter_forward_torch_params(x, w1, b1, w2, b2, *, skip_connect=True,
                                 tm=512, approximate_gelu=False,
                                 param_dtype=None):
    """Convenience wrapper taking PyTorch nn.Linear layouts (w1: [Dh, D], w2: [D, Dh]).

    In production, store weights pre-transposed (and, on v6e/v7x, pre-cast to
    bf16 via `param_dtype=jnp.bfloat16`) once instead of per call.
    """
    w1_t, w2_t = w1.T, w2.T
    if param_dtype is not None:
        w1_t = w1_t.astype(param_dtype)
        w2_t = w2_t.astype(param_dtype)
        x = x.astype(param_dtype)
    return adapter_forward(x, w1_t, b1, w2_t, b2, skip_connect=skip_connect,
                           tm=tm, approximate_gelu=approximate_gelu)


if __name__ == "__main__":
    # Small config consistent with the module: D_features=32, mlp_ratio=0.25 -> Dh=8.
    B, S, D = 2, 8, 32
    Dh = int(D * 0.25)

    key = jax.random.PRNGKey(0)
    kx, kw1, kb1, kw2, kb2 = jax.random.split(key, 5)

    x = jax.random.normal(kx, (B, S, D), dtype=jnp.float32)
    # PyTorch nn.Linear parameter layouts.
    w1 = jax.random.normal(kw1, (Dh, D), dtype=jnp.float32) * 0.05   # D_fc1.weight
    b1 = jax.random.normal(kb1, (Dh,), dtype=jnp.float32) * 0.05     # D_fc1.bias
    w2 = jax.random.normal(kw2, (D, Dh), dtype=jnp.float32) * 0.05   # D_fc2.weight
    b2 = jax.random.normal(kb2, (D,), dtype=jnp.float32) * 0.05      # D_fc2.bias

    # Prepare kernel-layout weights once (outside the hot path).
    w1_t, w2_t = w1.T, w2.T

    out = adapter_forward(x, w1_t, b1, w2_t, b2, skip_connect=True)
    out = jax.block_until_ready(out)

    # Reference (plain JAX), exact-erf GELU matches torch.nn.GELU() default.
    xs = x @ w1.T + b1
    xs = jax.nn.gelu(xs, approximate=False)
    xs = xs @ w2.T + b2
    ref = x + xs

    assert out.shape == (B, S, D)
    assert jnp.allclose(out, ref, atol=1e-5, rtol=1e-5), "mismatch vs reference"

    # skip_connect=False path.
    out_ns = jax.block_until_ready(
        adapter_forward(x, w1_t, b1, w2_t, b2, skip_connect=False))
    assert jnp.allclose(out_ns, xs, atol=1e-5, rtol=1e-5), "mismatch (no skip)"

    # bf16 weights/activations (v6e/v7x memory-bound recommendation); f32
    # accumulation + epilogue stay inside the kernel.
    out_bf16 = jax.block_until_ready(
        adapter_forward(x.astype(jnp.bfloat16),
                        w1_t.astype(jnp.bfloat16), b1,
                        w2_t.astype(jnp.bfloat16), b2,
                        skip_connect=True))
    assert out_bf16.shape == (B, S, D)
    assert jnp.allclose(out_bf16.astype(jnp.float32), ref, atol=5e-2, rtol=5e-2), \
        "mismatch (bf16 path)"

    print("KERNEL_OK")
</pallas_src>

<mosaic_0001>
module attributes {stable_mosaic.version = 11 : i64} {
  func.func @_adapter_kernel(%arg0: i32, %arg1: memref<8x32xf32, #tpu.memory_space<vmem>>, %arg2: memref<32x8xf32, #tpu.memory_space<vmem>>, %arg3: memref<1x8xf32, #tpu.memory_space<vmem>>, %arg4: memref<8x32xf32, #tpu.memory_space<vmem>>, %arg5: memref<1x32xf32, #tpu.memory_space<vmem>>, %arg6: memref<8x32xf32, #tpu.memory_space<vmem>>) attributes {dimension_semantics = [#tpu.dimension_semantics<parallel>], iteration_bounds = array<i64: 2>, scalar_prefetch = 0 : i64, scratch_operands = 0 : i64, tpu.core_type = #tpu.core_type<tc>, window_params = [{transform_indices = @transform_0, window_bounds = array<i64: 8, 32>}, {pipeline_mode = #tpu.pipeline_mode<synchronous>, transform_indices = @transform_1, window_bounds = array<i64: 32, 8>}, {pipeline_mode = #tpu.pipeline_mode<synchronous>, transform_indices = @transform_2, window_bounds = array<i64: 1, 8>}, {pipeline_mode = #tpu.pipeline_mode<synchronous>, transform_indices = @transform_3, window_bounds = array<i64: 8, 32>}, {pipeline_mode = #tpu.pipeline_mode<synchronous>, transform_indices = @transform_4, window_bounds = array<i64: 1, 32>}, {transform_indices = @transform_5, window_bounds = array<i64: 8, 32>}]} {
    %c0 = arith.constant 0 : index
    %c0_0 = arith.constant 0 : index
    %0 = vector.load %arg1[%c0, %c0_0] : memref<8x32xf32, #tpu.memory_space<vmem>>, vector<8x32xf32>
    %c0_1 = arith.constant 0 : index
    %c0_2 = arith.constant 0 : index
    %1 = vector.load %arg2[%c0_1, %c0_2] : memref<32x8xf32, #tpu.memory_space<vmem>>, vector<32x8xf32>
    %cst = arith.constant dense<0.000000e+00> : vector<8x8xf32>
    %2 = tpu.matmul %0, %1, %cst {dimension_numbers = #tpu.dot_dimension_numbers<[1], [0], [0], [1], [0, 0, 1, 1], [], []>} : vector<8x32xf32>, vector<32x8xf32>, vector<8x8xf32> -> vector<8x8xf32>
    %c0_3 = arith.constant 0 : index
    %c0_4 = arith.constant 0 : index
    %3 = vector.load %arg3[%c0_3, %c0_4] : memref<1x8xf32, #tpu.memory_space<vmem>>, vector<1x8xf32>
    %4 = vector.broadcast %3 : vector<1x8xf32> to vector<8x8xf32>
    %5 = arith.addf %2, %4 : vector<8x8xf32>
    %cst_5 = arith.constant 5.000000e-01 : f32
    %6 = vector.broadcast %cst_5 : f32 to vector<8x8xf32>
    %7 = arith.mulf %6, %5 : vector<8x8xf32>
    %cst_6 = arith.constant 0.707106769 : f32
    %8 = vector.broadcast %cst_6 : f32 to vector<8x8xf32>
    %9 = arith.mulf %5, %8 : vector<8x8xf32>
    %10 = math.erf %9 : vector<8x8xf32>
    %cst_7 = arith.constant 1.000000e+00 : f32
    %11 = vector.broadcast %cst_7 : f32 to vector<8x8xf32>
    %12 = arith.addf %11, %10 : vector<8x8xf32>
    %13 = arith.mulf %7, %12 : vector<8x8xf32>
    %c0_8 = arith.constant 0 : index
    %c0_9 = arith.constant 0 : index
    %14 = vector.load %arg4[%c0_8, %c0_9] : memref<8x32xf32, #tpu.memory_space<vmem>>, vector<8x32xf32>
    %cst_10 = arith.constant dense<0.000000e+00> : vector<8x32xf32>
    %15 = tpu.matmul %13, %14, %cst_10 {dimension_numbers = #tpu.dot_dimension_numbers<[1], [0], [0], [1], [0, 0, 1, 1], [], []>} : vector<8x8xf32>, vector<8x32xf32>, vector<8x32xf32> -> vector<8x32xf32>
    %c0_11 = arith.constant 0 : index
    %c0_12 = arith.constant 0 : index
    %16 = vector.load %arg5[%c0_11, %c0_12] : memref<1x32xf32, #tpu.memory_space<vmem>>, vector<1x32xf32>
    %17 = vector.broadcast %16 : vector<1x32xf32> to vector<8x32xf32>
    %18 = arith.addf %15, %17 : vector<8x32xf32>
    %19 = arith.addf %18, %0 : vector<8x32xf32>
    %c0_13 = arith.constant 0 : index
    %c0_14 = arith.constant 0 : index
    %20 = vector.load %arg6[%c0_13, %c0_14] : memref<8x32xf32, #tpu.memory_space<vmem>>, vector<8x32xf32>
    tpu.vector_store %arg6[%c0_13, %c0_14], %19 {strides = array<i32>} : memref<8x32xf32, #tpu.memory_space<vmem>>, vector<8x32xf32>,
    return
  }
  func.func @transform_0(%arg0: i32) -> (i32, i32) {
    %c0_i32 = arith.constant 0 : i32
    %c0_i32_0 = arith.constant 0 : i32
    return %arg0, %c0_i32 : i32, i32
  }
  func.func @transform_1(%arg0: i32) -> (i32, i32) {
    %c0_i32 = arith.constant 0 : i32
    %c0_i32_0 = arith.constant 0 : i32
    %c0_i32_1 = arith.constant 0 : i32
    return %c0_i32, %c0_i32_0 : i32, i32
  }
  func.func @transform_2(%arg0: i32) -> (i32, i32) {
    %c0_i32 = arith.constant 0 : i32
    %c0_i32_0 = arith.constant 0 : i32
    %c0_i32_1 = arith.constant 0 : i32
    return %c0_i32, %c0_i32_0 : i32, i32
  }
  func.func @transform_3(%arg0: i32) -> (i32, i32) {
    %c0_i32 = arith.constant 0 : i32
    %c0_i32_0 = arith.constant 0 : i32
    %c0_i32_1 = arith.constant 0 : i32
    return %c0_i32, %c0_i32_0 : i32, i32
  }
  func.func @transform_4(%arg0: i32) -> (i32, i32) {
    %c0_i32 = arith.constant 0 : i32
    %c0_i32_0 = arith.constant 0 : i32
    %c0_i32_1 = arith.constant 0 : i32
    return %c0_i32, %c0_i32_0 : i32, i32
  }
  func.func @transform_5(%arg0: i32) -> (i32, i32) {
    %c0_i32 = arith.constant 0 : i32
    %c0_i32_0 = arith.constant 0 : i32
    return %arg0, %c0_i32 : i32, i32
  }
}

module attributes {stable_mosaic.version = 11 : i64} {
  func.func @_adapter_kernel(%arg0: i32, %arg1: memref<8x32xf32, #tpu.memory_space<vmem>>, %arg2: memref<32x8xf32, #tpu.memory_space<vmem>>, %arg3: memref<1x8xf32, #tpu.memory_space<vmem>>, %arg4: memref<8x32xf32, #tpu.memory_space<vmem>>, %arg5: memref<1x32xf32, #tpu.memory_space<vmem>>, %arg6: memref<8x32xf32, #tpu.memory_space<vmem>>) attributes {dimension_semantics = [#tpu.dimension_semantics<parallel>], iteration_bounds = array<i64: 2>, scalar_prefetch = 0 : i64, scratch_operands = 0 : i64, tpu.core_type = #tpu.core_type<tc>, window_params = [{transform_indices = @transform_0, window_bounds = array<i64: 8, 32>}, {pipeline_mode = #tpu.pipeline_mode<synchronous>, transform_indices = @transform_1, window_bounds = array<i64: 32, 8>}, {pipeline_mode = #tpu.pipeline_mode<synchronous>, transform_indices = @transform_2, window_bounds = array<i64: 1, 8>}, {pipeline_mode = #tpu.pipeline_mode<synchronous>, transform_indices = @transform_3, window_bounds = array<i64: 8, 32>}, {pipeline_mode = #tpu.pipeline_mode<synchronous>, transform_indices = @transform_4, window_bounds = array<i64: 1, 32>}, {transform_indices = @transform_5, window_bounds = array<i64: 8, 32>}]} {
    %c0 = arith.constant 0 : index
    %c0_0 = arith.constant 0 : index
    %0 = vector.load %arg1[%c0, %c0_0] : memref<8x32xf32, #tpu.memory_space<vmem>>, vector<8x32xf32>
    %c0_1 = arith.constant 0 : index
    %c0_2 = arith.constant 0 : index
    %1 = vector.load %arg2[%c0_1, %c0_2] : memref<32x8xf32, #tpu.memory_space<vmem>>, vector<32x8xf32>
    %cst = arith.constant dense<0.000000e+00> : vector<8x8xf32>
    %2 = tpu.matmul %0, %1, %cst {dimension_numbers = #tpu.dot_dimension_numbers<[1], [0], [0], [1], [0, 0, 1, 1], [], []>} : vector<8x32xf32>, vector<32x8xf32>, vector<8x8xf32> -> vector<8x8xf32>
    %c0_3 = arith.constant 0 : index
    %c0_4 = arith.constant 0 : index
    %3 = vector.load %arg3[%c0_3, %c0_4] : memref<1x8xf32, #tpu.memory_space<vmem>>, vector<1x8xf32>
    %4 = vector.broadcast %3 : vector<1x8xf32> to vector<8x8xf32>
    %5 = arith.addf %2, %4 : vector<8x8xf32>
    %cst_5 = arith.constant 5.000000e-01 : f32
    %6 = vector.broadcast %cst_5 : f32 to vector<8x8xf32>
    %7 = arith.mulf %6, %5 : vector<8x8xf32>
    %cst_6 = arith.constant 0.707106769 : f32
    %8 = vector.broadcast %cst_6 : f32 to vector<8x8xf32>
    %9 = arith.mulf %5, %8 : vector<8x8xf32>
    %10 = math.erf %9 : vector<8x8xf32>
    %cst_7 = arith.constant 1.000000e+00 : f32
    %11 = vector.broadcast %cst_7 : f32 to vector<8x8xf32>
    %12 = arith.addf %11, %10 : vector<8x8xf32>
    %13 = arith.mulf %7, %12 : vector<8x8xf32>
    %c0_8 = arith.constant 0 : index
    %c0_9 = arith.constant 0 : index
    %14 = vector.load %arg4[%c0_8, %c0_9] : memref<8x32xf32, #tpu.memory_space<vmem>>, vector<8x32xf32>
    %cst_10 = arith.constant dense<0.000000e+00> : vector<8x32xf32>
    %15 = tpu.matmul %13, %14, %cst_10 {dimension_numbers = #tpu.dot_dimension_numbers<[1], [0], [0], [1], [0, 0, 1, 1], [], []>} : vector<8x8xf32>, vector<8x32xf32>, vector<8x32xf32> -> vector<8x32xf32>
    %c0_11 = arith.constant 0 : index
    %c0_12 = arith.constant 0 : index
    %16 = vector.load %arg5[%c0_11, %c0_12] : memref<1x32xf32, #tpu.memory_space<vmem>>, vector<1x32xf32>
    %17 = vector.broadcast %16 : vector<1x32xf32> to vector<8x32xf32>
    %18 = arith.addf %15, %17 : vector<8x32xf32>
    %19 = arith.addf %18, %0 : vector<8x32xf32>
    %c0_13 = arith.constant 0 : index
    %c0_14 = arith.constant 0 : index
    %20 = vector.load %arg6[%c0_13, %c0_14] : memref<8x32xf32, #tpu.memory_space<vmem>>, vector<8x32xf32>
    tpu.vector_store %arg6[%c0_13, %c0_14], %19 {strides = array<i32>} : memref<8x32xf32, #tpu.memory_space<vmem>>, vector<8x32xf32>,
    return
  }
  func.func @transform_0(%arg0: i32) -> (i32, i32) {
    %c0_i32 = arith.constant 0 : i32
    %c0_i32_0 = arith.constant 0 : i32
    return %arg0, %c0_i32 : i32, i32
  }
  func.func @transform_1(%arg0: i32) -> (i32, i32) {
    %c0_i32 = arith.constant 0 : i32
    %c0_i32_0 = arith.constant 0 : i32
    %c0_i32_1 = arith.constant 0 : i32
    return %c0_i32, %c0_i32_0 : i32, i32
  }
  func.func @transform_2(%arg0: i32) -> (i32, i32) {
    %c0_i32 = arith.constant 0 : i32
    %c0_i32_0 = arith.constant 0 : i32
    %c0_i32_1 = arith.constant 0 : i32
    return %c0_i32, %c0_i32_0 : i32, i32
  }
  func.func @transform_3(%arg0: i32) -> (i32, i32) {
    %c0_i32 = arith.constant 0 : i32
    %c0_i32_0 = arith.constant 0 : i32
    %c0_i32_1 = arith.constant 0 : i32
    return %c0_i32, %c0_i32_0 : i32, i32
  }
  func.func @transform_4(%arg0: i32) -> (i32, i32) {
    %c0_i32 = arith.constant 0 : i32
    %c0_i32_0 = arith.constant 0 : i32
    %c0_i32_1 = arith.constant 0 : i32
    return %c0_i32, %c0_i32_0 : i32, i32
  }
  func.func @transform_5(%arg0: i32) -> (i32, i32) {
    %c0_i32 = arith.constant 0 : i32
    %c0_i32_0 = arith.constant 0 : i32
    return %arg0, %c0_i32 : i32, i32
  }
}

</mosaic_0001>

<bundles_post_ra>
// kernel: tpu_custom_call.1
= control target key start
LH: loop header
LB: loop body
LE: loop exit
PB: predicated region body
PF: predicated region fallthrough
CT: control target
= control target key end

     0   :  { %10 = vsyncpa [#allocation3], 0  ;;  %s776_s0 = inlined_call_operand.vmem [shape: f32[16,32], index: 0, kind: input, shape index: {}]   ;;  %s777_s1 = inlined_call_operand.vmem [shape: f32[32,8], index: 1, kind: input, shape index: {}]   ;;  %s778_s2 = inlined_call_operand.vmem [shape: f32[1,8], index: 2, kind: input, shape index: {}]   ;;  %s779_s3 = inlined_call_operand.vmem [shape: f32[8,32], index: 3, kind: input, shape index: {}]   ;;  %s780_s4 = inlined_call_operand.vmem [shape: f32[1,32], index: 4, kind: input, shape index: {}]   ;;  %s781_s5 = inlined_call_operand.hbm [shape: f32[16,32], index: 5, kind: output, shape index: {}]  }
   0x1   :  { %12 = vsyncpa [#allocation3 + $0x1], 0  ;;  %s653_s18 = smov 0   ;;  %s655_s19 = smov 0  }
   0x2   :  { %s657_s20 = smov 0   ;;  %s659_s21 = smov 0  }
   0x3 LB: > { %s674_s22 = sadd.s32 4294967295, %s617_s21   ;;  %s468_s23 = sadd.s32 4294967294, %s617_s21   ;;  %s617_s21 = sphi %s659_s21, %s787_s21   ;;  %s613_s20 = sphi %s657_s20, %s786_s20   ;;  %s609_s19 = sphi %s655_s19, %s785_s19   ;;  %s605_s18 = sphi %s653_s18, %s784_s18  }
   0x4   : > { %s678_s24 = sadd.s32 1, %s617_s21   ;;  %s135_s25 = sadd.s32 1, %s613_s20 }
   0x5   : > { %s132_s26 = ssub.s32 %s617_s21, %s678_s24  ;;  %p145_p0 = scmp.ne.s32.totalorder %s613_s20, %s609_s19 }
   0x6   : > { %p133_p1 = scmp.eq.s32.totalorder %s132_s26, 0  ;;  %p146_p2 = scmp.eq.s32.totalorder %s674_s22, 1 }
   0x7   : > { %p151_p3 = scmp.ne.s32.totalorder %s609_s19, %s605_s18  ;;  %p152_p4 = scmp.eq.s32.totalorder %s468_s23, 1 }
   0x8   : > { %s689_s27 = scalar_select %p133_p1, %s613_s20, %s135_s25  }
   0x9   : > { %p691_p5 = por %p146_p2, %p145_p0  ;;  %p695_p6 = por %p152_p4, %p151_p3 }
   0xa   : > { %p471_p7 = scmp.ge.s32.totalorder %s617_s21, 1  ;;  %p189_p8 = scmp.lt.s32.totalorder %s617_s21, 3 }
   0xc   : > { %p190_p9 = pnand %p471_p7, %p189_p8 }
   0xd   : > { %v221_v0 = vld [vmem:[%s777_s1] sm:$0xff] (!%p190_p9)  ;;  %v222_v1 = vld [vmem:[%s777_s1 + $0x8] sm:$0xff] (!%p190_p9)  ;;  %v223_v2 = vld [vmem:[%s777_s1 + $0x10] sm:$0xff] (!%p190_p9)  ;;  %v619_v3 = vmov (!%p190_p9), 0.0|0.0   ;;  %vm620_vm0 = vmmov (!%p190_p9), 0   ;;  %v621_v6 = vmov (!%p190_p9), 0.0  }
   0xe   : > { %193 = sbr.rel (%p190_p9) target bundleno = 487 (0x1e7), region = 40  ;;  %505 = vmatprep.subr.bf16.mxu0 (!%p190_p9), %v619_v3  ;;  %v506_v4 = vpack.c.bf16 (!%p190_p9), %v222_v1, %v221_v0  ;;  %v224_v5 = vld [vmem:[%s777_s1 + $0x18] sm:$0xff] (!%p190_p9)  ;;  %497 = vmatprep.mubr.msk.f32.mxu0 (!%p190_p9), %vm620_vm0, %v621_v6  ;;  %p216_p10 = scmp.lt.s32.totalorder (!%p190_p9), %s674_s22, 1  ;;  %vm232_vm1 = vcmask (!%p190_p9), 261120   ;;  %v311_v9 = vld [vmem:[%s779_s3] sm:$0xff] (!%p190_p9)  ;;  %vm319_vm2 = vcmask (!%p190_p9), 64512  }
   0xf   : > { %500 = vmatprep.subr.mxu1 (!%p190_p9), %v621_v6  ;;  %502 = vmatprep.mubr.msk.f32.mxu1 (!%p190_p9), %vm620_vm0, %v621_v6  ;;  %v509_v7 = vpack.c.bf16 (!%p190_p9), %v224_v5, %v223_v2  ;;  %v474_v10 = vld [vmem:[%s778_s2] ss:$0 sm:$0xff] (!%p190_p9)  ;;  %s213_s6 = sand.u32 (!%p190_p9), 1, %s609_s19   ;;  %s479_s10 = sshll.u32 (!%p190_p9), %s674_s22, 7 }
  0x10   : > { %507 = vmatpush3.bf16.msra.mxu0 (!%p190_p9), %v506_v4  ;;  %501 = vmatpush3.msra.mxu1 (!%p190_p9), %v311_v9  ;;  %s472_s7 = sshll.u32 (!%p190_p9), %s213_s6, 3  ;;  %v476_v19 = vld [vmem:[%s780_s4] ss:$0 sm:$0xff] (!%p190_p9)  ;;  %s733_s15 = scalar_lea.hbm (!%p190_p9), %s781_s5, %s479_s10 }
  0x11   : > { %508 = vmatprep.subr.bf16.mxu0 (!%p190_p9), %v619_v3  ;;  %s215_s11 = scalar_lea.vmem (!%p190_p9), [#allocation2], %s472_s7  ;;  %s396_s16 = scalar_lea.sflag (!%p190_p9), [#allocation3], %s213_s6 }
  0x12   : > { %s409_s12 = sshll.u32 (!%p190_p9), %s215_s11, 4  ;;  %s735_s12 = int_to_ptr.vmem [resolvable:$true] %s409_s12 }
  0x14   : > { %510 = vmatpush3.bf16.msra.mxu0 (!%p190_p9), %v509_v7 }
  0x15   : > { %s217_s13 = scalar_select %p216_p10, %s674_s22, 1 }
  0x16   : > { %s622_s22 = smov [#allocation2]  }
  0x17   : > { %s473_s14 = sshll.u32 %s217_s13, 3  ;;  %s559_s23 = sshll.u32 %s622_s22, 4  ;;  %s560_s23 = int_to_ptr.vmem [resolvable:$false] %s559_s23 }
  0x18   : > { %s219_s17 = scalar_lea.vmem %s776_s0, %s473_s14  ;;  %s561_s25 = scalar_lea.vmem %s560_s23, 256 }
  0x19   : > { %v220_v8 = vld [vmem:[%s219_s17] sm:$0xff]  ;;  %s555_s17 = scalar_lea.vmem %s735_s12, 128  ;;  %p562_p0 = scmp.lt.s32.totalorder %s735_s12, %s560_s23 }
  0x1a   : > { %498 = vmatmul.mubr.msk.f32.vlgmr.msra.gmra.mrb[0].mxu0 %vm232_vm1, %v220_v8  ;;  %p556_p11 = scmp.ne.s32.totalorder %s735_s12, %s555_s17  ;;  %p563_p1 = scmp.lt.s32.totalorder %s561_s25, %s555_s17 }
  0x1c   : > { %p557_p12 = pnand %p556_p11, %p691_p5  ;;  %p564_p2 = por %p563_p1, %p562_p0 }
  0x1e   : > { %p558_p13 = pneg %p557_p12 }
  0x20   : > { %p565_p3 = pnand %p564_p2, %p558_p13 }
  0xed   : > { %v302_v11 = vpop.f32.mrb[0].mxu0 }
  0xee   : > { %v303_v12 = vadd.f32 %v474_v10, %v302_v11  ;;  %v499_v13 = vpop.f32.mrb[1].mxu0 }
  0xf0   : > { %v307_v14 = vmul.f32 0.70710677, %v303_v12  ;;  %v306_v16 = vmul.f32 0.5, %v303_v12 }
  0xf2   : > { %553 = verf.f32 %v307_v14 }
  0xfc   : > { %v554_v15 = vpop.eup %553 }
  0xfd   : > { %v309_v17 = vadd.f32 1.0, %v554_v15 }
  0xff   : > { %v310_v18 = vmul.f32 %v309_v17, %v306_v16 }
 0x101   : > { %503 = vmatmul.mubr.msk.f32.vlgmr.msra.gmra.mrb[0].mxu1 %vm319_vm2, %v310_v18 }
 0x1d4   : > { %v389_v20 = vpop.f32.mrb[0].mxu1 }
 0x1d5   : > { %v390_v21 = vadd.f32 %v476_v19, %v389_v20  ;;  %v504_v22 = vpop.f32.mrb[1].mxu1 }
 0x1d7   : > { %v393_v23 = vadd.f32 %v390_v21, %v220_v8 }
 0x1d9   : > { %394 = vst.msk [vmem:[%s215_s11] sm:$0xff] %vm232_vm1, %v393_v23 }
 0x1da   : > { %568 = shalt.err (!%p565_p3)
}
 0x1db   : > { %s569_s26 = scalar_lea.hbm %s733_s15, 128  ;;  %s573_s7 = scalar_lea.hbm %s781_s5, 256 }
 0x1dc   : > { %p570_p4 = scmp.ne.s32.totalorder %s733_s15, %s569_s26  ;;  %p574_p9 = scmp.lt.u32.totalorder %s733_s15, %s781_s5 }
 0x1dd   : > { %p575_p10 = scmp.lt.u32.totalorder %s573_s7, %s569_s26  ;;  %p577_p12 = scmp.lt.u32.totalorder %s569_s26, %s733_s15 }
 0x1de   : > { %p571_p7 = pnand %p570_p4, %p691_p5 }
 0x1df   : > { %p576_p11 = por %p575_p10, %p574_p9 }
 0x1e0   : > { %p572_p8 = pneg %p571_p7 }
 0x1e1   : > { %p578_p13 = por %p577_p12, %p576_p11 }
 0x1e3   : > { %p579_p0 = pnand %p578_p13, %p572_p8 }
 0x1e5   : > { %582 = shalt.err (!%p579_p0)
}
 0x1e6   : > { %511 = dma.vmem_to_hbm [thread:$0]  (%p691_p5), %s735_s12, 128, %s733_s15, %s396_s16  }
 0x1e7 PF: > { %p517_p1 = scmp.ge.s32.totalorder %s617_s21, 2  ;;  %s421_s10 = sand.u32 1, %s605_s18  }
 0x1e8   : > { %s422_s11 = scalar_lea.sflag [#allocation3], %s421_s10 }
 0x1e9   : > { %p514_p2 = pnand %p517_p1, %p695_p6 }
 0x1eb   : > { %600 = dma.done.wait (!%p514_p2), %s422_s11, 128  }
 0x1ec   : > { %602 = vsyncadd (!%p514_p2), %s422_s11, 4294967168  ;;  %p15_p3 = scmp.ge.s32.totalorder %s678_s24, 4   ;;  %s784_s18 = smov %s609_s19 }
 0x1ed   : > { %s785_s19 = smov %s613_s20  ;;  %s786_s20 = smov %s689_s27 }
 0x1ee   : > { %s787_s21 = smov %s678_s24  ;;  %17 = sbr.rel (!%p15_p3) target bundleno = 3 (0x3), region = 75 }
 0x1f5   :  { %427 = vsyncpa [#allocation3], 1 }
 0x1f6   :  { %429 = vsyncpa [#allocation3 + $0x1], 1 }

// kernel: tpu_custom_call.1
= control target key start
LH: loop header
LB: loop body
LE: loop exit
PB: predicated region body
PF: predicated region fallthrough
CT: control target
= control target key end

     0   :  { %10 = vsyncpa [#allocation3], 0  ;;  %s776_s0 = inlined_call_operand.vmem [shape: f32[16,32], index: 0, kind: input, shape index: {}]   ;;  %s777_s1 = inlined_call_operand.vmem [shape: f32[32,8], index: 1, kind: input, shape index: {}]   ;;  %s778_s2 = inlined_call_operand.vmem [shape: f32[1,8], index: 2, kind: input, shape index: {}]   ;;  %s779_s3 = inlined_call_operand.vmem [shape: f32[8,32], index: 3, kind: input, shape index: {}]   ;;  %s780_s4 = inlined_call_operand.vmem [shape: f32[1,32], index: 4, kind: input, shape index: {}]   ;;  %s781_s5 = inlined_call_operand.hbm [shape: f32[16,32], index: 5, kind: output, shape index: {}]  }
   0x1   :  { %12 = vsyncpa [#allocation3 + $0x1], 0  ;;  %s653_s18 = smov 0   ;;  %s655_s19 = smov 0  }
   0x2   :  { %s657_s20 = smov 0   ;;  %s659_s21 = smov 0  }
   0x3 LB: > { %s674_s22 = sadd.s32 4294967295, %s617_s21   ;;  %s468_s23 = sadd.s32 4294967294, %s617_s21   ;;  %s617_s21 = sphi %s659_s21, %s787_s21   ;;  %s613_s20 = sphi %s657_s20, %s786_s20   ;;  %s609_s19 = sphi %s655_s19, %s785_s19   ;;  %s605_s18 = sphi %s653_s18, %s784_s18  }
   0x4   : > { %s678_s24 = sadd.s32 1, %s617_s21   ;;  %s135_s25 = sadd.s32 1, %s613_s20 }
   0x5   : > { %s132_s26 = ssub.s32 %s617_s21, %s678_s24  ;;  %p145_p0 = scmp.ne.s32.totalorder %s613_s20, %s609_s19 }
   0x6   : > { %p133_p1 = scmp.eq.s32.totalorder %s132_s26, 0  ;;  %p146_p2 = scmp.eq.s32.totalorder %s674_s22, 1 }
   0x7   : > { %p151_p3 = scmp.ne.s32.totalorder %s609_s19, %s605_s18  ;;  %p152_p4 = scmp.eq.s32.totalorder %s468_s23, 1 }
   0x8   : > { %s689_s27 = scalar_select %p133_p1, %s613_s20, %s135_s25  }
   0x9   : > { %p691_p5 = por %p146_p2, %p145_p0  ;;  %p695_p6 = por %p152_p4, %p151_p3 }
   0xa   : > { %p471_p7 = scmp.ge.s32.totalorder %s617_s21, 1  ;;  %p189_p8 = scmp.lt.s32.totalorder %s617_s21, 3 }
   0xc   : > { %p190_p9 = pnand %p471_p7, %p189_p8 }
   0xd   : > { %v221_v0 = vld [vmem:[%s777_s1] sm:$0xff] (!%p190_p9)  ;;  %v222_v1 = vld [vmem:[%s777_s1 + $0x8] sm:$0xff] (!%p190_p9)  ;;  %v223_v2 = vld [vmem:[%s777_s1 + $0x10] sm:$0xff] (!%p190_p9)  ;;  %v619_v3 = vmov (!%p190_p9), 0.0|0.0   ;;  %vm620_vm0 = vmmov (!%p190_p9), 0   ;;  %v621_v6 = vmov (!%p190_p9), 0.0  }
   0xe   : > { %193 = sbr.rel (%p190_p9) target bundleno = 487 (0x1e7), region = 40  ;;  %505 = vmatprep.subr.bf16.mxu0 (!%p190_p9), %v619_v3  ;;  %v506_v4 = vpack.c.bf16 (!%p190_p9), %v222_v1, %v221_v0  ;;  %v224_v5 = vld [vmem:[%s777_s1 + $0x18] sm:$0xff] (!%p190_p9)  ;;  %497 = vmatprep.mubr.msk.f32.mxu0 (!%p190_p9), %vm620_vm0, %v621_v6  ;;  %p216_p10 = scmp.lt.s32.totalorder (!%p190_p9), %s674_s22, 1  ;;  %vm232_vm1 = vcmask (!%p190_p9), 261120   ;;  %v311_v9 = vld [vmem:[%s779_s3] sm:$0xff] (!%p190_p9)  ;;  %vm319_vm2 = vcmask (!%p190_p9), 64512  }
   0xf   : > { %500 = vmatprep.subr.mxu1 (!%p190_p9), %v621_v6  ;;  %502 = vmatprep.mubr.msk.f32.mxu1 (!%p190_p9), %vm620_vm0, %v621_v6  ;;  %v509_v7 = vpack.c.bf16 (!%p190_p9), %v224_v5, %v223_v2  ;;  %v474_v10 = vld [vmem:[%s778_s2] ss:$0 sm:$0xff] (!%p190_p9)  ;;  %s213_s6 = sand.u32 (!%p190_p9), 1, %s609_s19   ;;  %s479_s10 = sshll.u32 (!%p190_p9), %s674_s22, 7 }
  0x10   : > { %507 = vmatpush3.bf16.msra.mxu0 (!%p190_p9), %v506_v4  ;;  %501 = vmatpush3.msra.mxu1 (!%p190_p9), %v311_v9  ;;  %s472_s7 = sshll.u32 (!%p190_p9), %s213_s6, 3  ;;  %v476_v19 = vld [vmem:[%s780_s4] ss:$0 sm:$0xff] (!%p190_p9)  ;;  %s733_s15 = scalar_lea.hbm (!%p190_p9), %s781_s5, %s479_s10 }
  0x11   : > { %508 = vmatprep.subr.bf16.mxu0 (!%p190_p9), %v619_v3  ;;  %s215_s11 = scalar_lea.vmem (!%p190_p9), [#allocation2], %s472_s7  ;;  %s396_s16 = scalar_lea.sflag (!%p190_p9), [#allocation3], %s213_s6 }
  0x12   : > { %s409_s12 = sshll.u32 (!%p190_p9), %s215_s11, 4  ;;  %s735_s12 = int_to_ptr.vmem [resolvable:$true] %s409_s12 }
  0x14   : > { %510 = vmatpush3.bf16.msra.mxu0 (!%p190_p9), %v509_v7 }
  0x15   : > { %s217_s13 = scalar_select %p216_p10, %s674_s22, 1 }
  0x16   : > { %s622_s22 = smov [#allocation2]  }
  0x17   : > { %s473_s14 = sshll.u32 %s217_s13, 3  ;;  %s559_s23 = sshll.u32 %s622_s22, 4  ;;  %s560_s23 = int_to_ptr.vmem [resolvable:$false] %s559_s23 }
  0x18   : > { %s219_s17 = scalar_lea.vmem %s776_s0, %s473_s14  ;;  %s561_s25 = scalar_lea.vmem %s560_s23, 256 }
  0x19   : > { %v220_v8 = vld [vmem:[%s219_s17] sm:$0xff]  ;;  %s555_s17 = scalar_lea.vmem %s735_s12, 128  ;;  %p562_p0 = scmp.lt.s32.totalorder %s735_s12, %s560_s23 }
  0x1a   : > { %498 = vmatmul.mubr.msk.f32.vlgmr.msra.gmra.mrb[0].mxu0 %vm232_vm1, %v220_v8  ;;  %p556_p11 = scmp.ne.s32.totalorder %s735_s12, %s555_s17  ;;  %p563_p1 = scmp.lt.s32.totalorder %s561_s25, %s555_s17 }
  0x1c   : > { %p557_p12 = pnand %p556_p11, %p691_p5  ;;  %p564_p2 = por %p563_p1, %p562_p0 }
  0x1e   : > { %p558_p13 = pneg %p557_p12 }
  0x20   : > { %p565_p3 = pnand %p564_p2, %p558_p13 }
  0xed   : > { %v302_v11 = vpop.f32.mrb[0].mxu0 }
  0xee   : > { %v303_v12 = vadd.f32 %v474_v10, %v302_v11  ;;  %v499_v13 = vpop.f32.mrb[1].mxu0 }
  0xf0   : > { %v307_v14 = vmul.f32 0.70710677, %v303_v12  ;;  %v306_v16 = vmul.f32 0.5, %v303_v12 }
  0xf2   : > { %553 = verf.f32 %v307_v14 }
  0xfc   : > { %v554_v15 = vpop.eup %553 }
  0xfd   : > { %v309_v17 = vadd.f32 1.0, %v554_v15 }
  0xff   : > { %v310_v18 = vmul.f32 %v309_v17, %v306_v16 }
 0x101   : > { %503 = vmatmul.mubr.msk.f32.vlgmr.msra.gmra.mrb[0].mxu1 %vm319_vm2, %v310_v18 }
 0x1d4   : > { %v389_v20 = vpop.f32.mrb[0].mxu1 }
 0x1d5   : > { %v390_v21 = vadd.f32 %v476_v19, %v389_v20  ;;  %v504_v22 = vpop.f32.mrb[1].mxu1 }
 0x1d7   : > { %v393_v23 = vadd.f32 %v390_v21, %v220_v8 }
 0x1d9   : > { %394 = vst.msk [vmem:[%s215_s11] sm:$0xff] %vm232_vm1, %v393_v23 }
 0x1da   : > { %568 = shalt.err (!%p565_p3)
}
 0x1db   : > { %s569_s26 = scalar_lea.hbm %s733_s15, 128  ;;  %s573_s7 = scalar_lea.hbm %s781_s5, 256 }
 0x1dc   : > { %p570_p4 = scmp.ne.s32.totalorder %s733_s15, %s569_s26  ;;  %p574_p9 = scmp.lt.u32.totalorder %s733_s15, %s781_s5 }
 0x1dd   : > { %p575_p10 = scmp.lt.u32.totalorder %s573_s7, %s569_s26  ;;  %p577_p12 = scmp.lt.u32.totalorder %s569_s26, %s733_s15 }
 0x1de   : > { %p571_p7 = pnand %p570_p4, %p691_p5 }
 0x1df   : > { %p576_p11 = por %p575_p10, %p574_p9 }
 0x1e0   : > { %p572_p8 = pneg %p571_p7 }
 0x1e1   : > { %p578_p13 = por %p577_p12, %p576_p11 }
 0x1e3   : > { %p579_p0 = pnand %p578_p13, %p572_p8 }
 0x1e5   : > { %582 = shalt.err (!%p579_p0)
}
 0x1e6   : > { %511 = dma.vmem_to_hbm [thread:$0]  (%p691_p5), %s735_s12, 128, %s733_s15, %s396_s16  }
 0x1e7 PF: > { %p517_p1 = scmp.ge.s32.totalorder %s617_s21, 2  ;;  %s421_s10 = sand.u32 1, %s605_s18  }
 0x1e8   : > { %s422_s11 = scalar_lea.sflag [#allocation3], %s421_s10 }
 0x1e9   : > { %p514_p2 = pnand %p517_p1, %p695_p6 }
 0x1eb   : > { %600 = dma.done.wait (!%p514_p2), %s422_s11, 128  }
 0x1ec   : > { %602 = vsyncadd (!%p514_p2), %s422_s11, 4294967168  ;;  %p15_p3 = scmp.ge.s32.totalorder %s678_s24, 4   ;;  %s784_s18 = smov %s609_s19 }
 0x1ed   : > { %s785_s19 = smov %s613_s20  ;;  %s786_s20 = smov %s689_s27 }
 0x1ee   : > { %s787_s21 = smov %s678_s24  ;;  %17 = sbr.rel (!%p15_p3) target bundleno = 3 (0x3), region = 75 }
 0x1f5   :  { %427 = vsyncpa [#allocation3], 1 }
 0x1f6   :  { %429 = vsyncpa [#allocation3 + $0x1], 1 }

</bundles_post_ra>
